<compile_context>
chip_gen: v5e
topology: v5e:2x2
jax: 0.10.0
libtpu: 0.0.40
codegen_flags: <defaults>
</compile_context>

<pallas_src>
import math

import jax
import jax.numpy as jnp
from jax.experimental import pallas as pl
from jax.experimental.pallas import tpu as pltpu

LN_EPS = 1e-5                      # PyTorch nn.LayerNorm default
_SINGLE_BUFFER_CONST_MIN_E = 256   # single-buffer resident weight once it is big


def _round_up(x, m):
    return ((x + m - 1) // m) * m


def _cross_attn_kernel(v_ref, w_ref, vec_ref, out_ref):
    """One (TILE_N, E) row tile: fused (v-proj @ out-proj) matmul + residual + LN."""
    v_in = v_ref[...]                          # (TN, E) source dtype
    w = w_ref[...]                             # (E, E)  bf16 fused weight
    b_fused = vec_ref[0:1, :]                  # (1, E)  f32
    gamma = vec_ref[1:2, :]                    # (1, E)  f32
    beta = vec_ref[2:3, :]                     # (1, E)  f32

    # Attention output for L=1: out_proj(v_proj(v)) -> one bf16 MXU matmul, f32 acc.
    o = jnp.dot(v_in.astype(jnp.bfloat16), w,
                preferred_element_type=jnp.float32) + b_fused

    # dropout1/2/3 are identity at inference; residual + LayerNorm in f32 (VPU/EUP).
    res = v_in.astype(jnp.float32) + o
    mu = jnp.mean(res, axis=-1, keepdims=True)
    c = res - mu
    var = jnp.mean(c * c, axis=-1, keepdims=True)
    y = c * jax.lax.rsqrt(var + LN_EPS) * gamma + beta
    out_ref[...] = y.astype(out_ref.dtype)


def fuse_cross_attention_params(params):
    """One-time parameter fusion (call at model load, NOT on the per-forward path)."""
    wv = params["wv"].astype(jnp.float32)
    wo = params["wo"].astype(jnp.float32)
    # out = v @ (Wv^T @ Wo^T) + (bv @ Wo^T + bo)
    w_fused = (wv.T @ wo.T).astype(jnp.bfloat16)                     # (E, E) bf16
    b_fused = params["bv"].astype(jnp.float32) @ wo.T + params["bo"].astype(jnp.float32)
    vecs = jnp.stack([b_fused,
                      params["gamma"].astype(jnp.float32),
                      params["beta"].astype(jnp.float32)], axis=0)   # (3, E) f32
    return {"w_fused": w_fused, "vecs": vecs}


def _choose_tile_n(n, e, itemsize):
    """Bytes-based tile sizing with a >=2-step grid for megacore sharding."""
    target_bytes = 2 << 20                       # ~2 MiB of v per block buffer
    tile = max(8, (target_bytes // (e * itemsize)) // 8 * 8)
    tile = min(tile, _round_up(n, 8))            # never bigger than the problem
    if n > 8 and -(-n // tile) < 2:              # guarantee >= 2 grid steps (v7x 2 TCs)
        tile = max(8, _round_up(-(-n // 2), 8))
    return tile


def cross_attention_pallas(q, k, v, fused_params, *, num_heads, tile_n=None):
    """Equivalent of CrossAttentionModule.forward (eval mode).

    Valid ONLY because the module does unsqueeze(0): the attention sequence length
    is 1, so softmax weights are identically 1.0 and q/k never affect the result.
    They are intentionally not DMA'd.
    """
    assert q.ndim == 2 and k.ndim == 2 and v.ndim == 2, "expects (N, E) inputs (L=1 path)"
    assert q.shape == k.shape == v.shape
    del q, k
    n, e = v.shape
    assert e % num_heads == 0

    w_fused = fused_params["w_fused"]            # (E, E) bf16
    vecs = fused_params["vecs"]                  # (3, E) f32

    v_itemsize = jnp.dtype(v.dtype).itemsize
    out_dtype = v.dtype                          # emit in the consumer's dtype
    out_itemsize = jnp.dtype(out_dtype).itemsize

    if tile_n is None:
        tile_n = _choose_tile_n(n, e, v_itemsize)

    # Arbitrary N: pad to tile granularity, slice back after the call.
    n_pad = _round_up(n, tile_n)
    v_in = v if n_pad == n else jnp.pad(v, ((0, n_pad - n), (0, 0)))
    grid_n = n_pad // tile_n

    tile_spec = pl.BlockSpec((tile_n, e), lambda i: (i, 0))
    # Constant-index blocks: single-buffer once E is production-sized (their index
    # maps never change, so a second buffer is dead VMEM — matters on v7x's 64 MiB).
    const_kwargs = dict(pipeline_mode=pl.Buffered(1)) if e >= _SINGLE_BUFFER_CONST_MIN_E else {}
    const_bufs = 1 if e >= _SINGLE_BUFFER_CONST_MIN_E else 2
    w_spec = pl.BlockSpec((e, e), lambda i: (0, 0), **const_kwargs)
    vec_spec = pl.BlockSpec((3, e), lambda i: (0, 0), **const_kwargs)

    # VMEM budget from the actual block sizes (double-buffered v in/out + constants),
    # with headroom, capped well under v7x's 64 MiB physical VMEM.
    block_bytes = (2 * tile_n * e * v_itemsize
                   + 2 * tile_n * e * out_itemsize
                   + const_bufs * e * e * 2
                   + const_bufs * 3 * e * 4)
    vmem_limit = int(min(48 << 20, max(2 * block_bytes, 16 << 20)))

    out = pl.pallas_call(
        _cross_attn_kernel,
        out_shape=jax.ShapeDtypeStruct((n_pad, e), out_dtype),
        grid_spec=pltpu.PrefetchScalarGridSpec(
            num_scalar_prefetch=0,
            grid=(grid_n,),
            in_specs=[tile_spec, w_spec, vec_spec],
            out_specs=tile_spec),
        compiler_params=pltpu.CompilerParams(
            dimension_semantics=("parallel",),
            vmem_limit_bytes=vmem_limit),
    )(v_in, w_fused, vecs)

    # TODO(synk): if production E stays at 32 (<128 lanes), pack 4 tokens per
    # 128-lane row (block-diagonal fused weight + segmented LN) for lane-dense
    # MXU passes and unmasked stores.
    return out if n_pad == n else out[:n]


def cross_attention_ref(q, k, v, p, *, num_heads):
    """Pure-JAX reference mirroring the PyTorch forward (eval mode), full attention path."""
    n, e = q.shape
    dh = e // num_heads
    qp = q @ p["wq"].T + p["bq"]
    kp = k @ p["wk"].T + p["bk"]
    vp = v @ p["wv"].T + p["bv"]
    qh = (qp / math.sqrt(dh)).reshape(n, num_heads, 1, dh)
    kh = kp.reshape(n, num_heads, 1, dh)
    vh = vp.reshape(n, num_heads, 1, dh)
    s = jnp.einsum("nhqd,nhkd->nhqk", qh, kh)
    w = jax.nn.softmax(s, axis=-1)               # (n, H, 1, 1) -> all ones
    attn = jnp.einsum("nhqk,nhkd->nhqd", w, vh).reshape(n, e)
    o = attn @ p["wo"].T + p["bo"]
    res = v + o
    mu = res.mean(-1, keepdims=True)
    var = ((res - mu) ** 2).mean(-1, keepdims=True)
    return (res - mu) / jnp.sqrt(var + LN_EPS) * p["gamma"] + p["beta"]


if __name__ == "__main__":
    N, E, H = 16, 32, 4   # opt.in_dim = 32, opt.num_heads = 4; 16 tokens

    key = jax.random.PRNGKey(0)
    ks = jax.random.split(key, 12)
    q = jax.random.normal(ks[0], (N, E), jnp.float32)
    k = jax.random.normal(ks[1], (N, E), jnp.float32)
    v = jax.random.normal(ks[2], (N, E), jnp.float32)

    # Deterministic synthetic parameters (shapes per nn.MultiheadAttention /
    # nn.LayerNorm in __init__); NOT loaded from a checkpoint.
    s = 1.0 / math.sqrt(E)
    params = {
        "wq": jax.random.normal(ks[3], (E, E), jnp.float32) * s,
        "wk": jax.random.normal(ks[4], (E, E), jnp.float32) * s,
        "wv": jax.random.normal(ks[5], (E, E), jnp.float32) * s,
        "wo": jax.random.normal(ks[6], (E, E), jnp.float32) * s,
        "bq": jax.random.normal(ks[7], (E,), jnp.float32) * 0.02,
        "bk": jax.random.normal(ks[8], (E,), jnp.float32) * 0.02,
        "bv": jax.random.normal(ks[9], (E,), jnp.float32) * 0.02,
        "bo": jax.random.normal(ks[10], (E,), jnp.float32) * 0.02,
        "gamma": jnp.ones((E,), jnp.float32),
        "beta": jnp.zeros((E,), jnp.float32),
    }

    # One-time parameter fusion (hoisted off the per-forward path).
    fused = jax.tree_util.tree_map(jax.block_until_ready,
                                   fuse_cross_attention_params(params))

    out = cross_attention_pallas(q, k, v, fused, num_heads=H)
    out = jax.block_until_ready(out)

    ref = cross_attention_ref(q, k, v, params, num_heads=H)
    assert out.shape == (N, E)
    # bf16 fused weight + f32 accumulation: small, bounded deviation vs f32 reference.
    assert jnp.allclose(out.astype(jnp.float32), ref, atol=2e-2, rtol=2e-2), \
        "mismatch vs reference"

    print("KERNEL_OK")
</pallas_src>

<mosaic_0001>
module attributes {stable_mosaic.version = 11 : i64} {
  func.func @_cross_attn_kernel(%arg0: i32, %arg1: memref<8x32xf32, #tpu.memory_space<vmem>>, %arg2: memref<32x32xbf16, #tpu.memory_space<vmem>>, %arg3: memref<3x32xf32, #tpu.memory_space<vmem>>, %arg4: memref<8x32xf32, #tpu.memory_space<vmem>>) attributes {dimension_semantics = [#tpu.dimension_semantics<parallel>], iteration_bounds = array<i64: 2>, scalar_prefetch = 0 : i64, scratch_operands = 0 : i64, tpu.core_type = #tpu.core_type<tc>, window_params = [{transform_indices = @transform_0, window_bounds = array<i64: 8, 32>}, {pipeline_mode = #tpu.pipeline_mode<synchronous>, transform_indices = @transform_1, window_bounds = array<i64: 32, 32>}, {pipeline_mode = #tpu.pipeline_mode<synchronous>, transform_indices = @transform_2, window_bounds = array<i64: 3, 32>}, {transform_indices = @transform_3, window_bounds = array<i64: 8, 32>}]} {
    %c0 = arith.constant 0 : index
    %c0_0 = arith.constant 0 : index
    %0 = vector.load %arg1[%c0, %c0_0] : memref<8x32xf32, #tpu.memory_space<vmem>>, vector<8x32xf32>
    %c0_1 = arith.constant 0 : index
    %c0_2 = arith.constant 0 : index
    %1 = vector.load %arg2[%c0_1, %c0_2] : memref<32x32xbf16, #tpu.memory_space<vmem>>, vector<32x32xbf16>
    %c0_3 = arith.constant 0 : index
    %c0_4 = arith.constant 0 : index
    %2 = vector.load %arg3[%c0_3, %c0_4] : memref<3x32xf32, #tpu.memory_space<vmem>>, vector<1x32xf32>
    %c1 = arith.constant 1 : index
    %c0_5 = arith.constant 0 : index
    %3 = vector.load %arg3[%c1, %c0_5] : memref<3x32xf32, #tpu.memory_space<vmem>>, vector<1x32xf32>
    %c2 = arith.constant 2 : index
    %c0_6 = arith.constant 0 : index
    %4 = vector.load %arg3[%c2, %c0_6] : memref<3x32xf32, #tpu.memory_space<vmem>>, vector<1x32xf32>
    %5 = arith.truncf %0 : vector<8x32xf32> to vector<8x32xbf16>
    %cst = arith.constant dense<0.000000e+00> : vector<8x32xf32>
    %6 = tpu.matmul %5, %1, %cst {dimension_numbers = #tpu.dot_dimension_numbers<[1], [0], [0], [1], [0, 0, 1, 1], [], []>} : vector<8x32xbf16>, vector<32x32xbf16>, vector<8x32xf32> -> vector<8x32xf32>
    %7 = vector.broadcast %2 : vector<1x32xf32> to vector<8x32xf32>
    %8 = arith.addf %6, %7 : vector<8x32xf32>
    %9 = arith.addf %0, %8 : vector<8x32xf32>
    %cst_7 = arith.constant dense<0.000000e+00> : vector<8xf32>
    %10 = vector.multi_reduction <add>, %9, %cst_7 [1] : vector<8x32xf32> to vector<8xf32>
    %11 = vector.shape_cast %10 : vector<8xf32> to vector<8x1xf32>
    %cst_8 = arith.constant 3.200000e+01 : f32
    %12 = vector.broadcast %cst_8 : f32 to vector<8x1xf32>
    %13 = arith.divf %11, %12 : vector<8x1xf32>
    %14 = vector.broadcast %13 : vector<8x1xf32> to vector<8x32xf32>
    %15 = arith.subf %9, %14 : vector<8x32xf32>
    %16 = arith.mulf %15, %15 : vector<8x32xf32>
    %cst_9 = arith.constant dense<0.000000e+00> : vector<8xf32>
    %17 = vector.multi_reduction <add>, %16, %cst_9 [1] : vector<8x32xf32> to vector<8xf32>
    %18 = vector.shape_cast %17 : vector<8xf32> to vector<8x1xf32>
    %cst_10 = arith.constant 3.200000e+01 : f32
    %19 = vector.broadcast %cst_10 : f32 to vector<8x1xf32>
    %20 = arith.divf %18, %19 : vector<8x1xf32>
    %cst_11 = arith.constant 9.99999974E-6 : f32
    %21 = vector.broadcast %cst_11 : f32 to vector<8x1xf32>
    %22 = arith.addf %20, %21 : vector<8x1xf32>
    %23 = math.rsqrt %22 : vector<8x1xf32>
    %24 = vector.broadcast %23 : vector<8x1xf32> to vector<8x32xf32>
    %25 = arith.mulf %15, %24 : vector<8x32xf32>
    %26 = vector.broadcast %3 : vector<1x32xf32> to vector<8x32xf32>
    %27 = arith.mulf %25, %26 : vector<8x32xf32>
    %28 = vector.broadcast %4 : vector<1x32xf32> to vector<8x32xf32>
    %29 = arith.addf %27, %28 : vector<8x32xf32>
    %c0_12 = arith.constant 0 : index
    %c0_13 = arith.constant 0 : index
    %30 = vector.load %arg4[%c0_12, %c0_13] : memref<8x32xf32, #tpu.memory_space<vmem>>, vector<8x32xf32>
    tpu.vector_store %arg4[%c0_12, %c0_13], %29 {strides = array<i32>} : memref<8x32xf32, #tpu.memory_space<vmem>>, vector<8x32xf32>,
    return
  }
  func.func @transform_0(%arg0: i32) -> (i32, i32) {
    %c0_i32 = arith.constant 0 : i32
    %c0_i32_0 = arith.constant 0 : i32
    return %arg0, %c0_i32 : i32, i32
  }
  func.func @transform_1(%arg0: i32) -> (i32, i32) {
    %c0_i32 = arith.constant 0 : i32
    %c0_i32_0 = arith.constant 0 : i32
    %c0_i32_1 = arith.constant 0 : i32
    return %c0_i32, %c0_i32_0 : i32, i32
  }
  func.func @transform_2(%arg0: i32) -> (i32, i32) {
    %c0_i32 = arith.constant 0 : i32
    %c0_i32_0 = arith.constant 0 : i32
    %c0_i32_1 = arith.constant 0 : i32
    return %c0_i32, %c0_i32_0 : i32, i32
  }
  func.func @transform_3(%arg0: i32) -> (i32, i32) {
    %c0_i32 = arith.constant 0 : i32
    %c0_i32_0 = arith.constant 0 : i32
    return %arg0, %c0_i32 : i32, i32
  }
}

</mosaic_0001>

<bundles_post_ra>
// kernel: tpu_custom_call.1
= control target key start
LH: loop header
LB: loop body
LE: loop exit
PB: predicated region body
PF: predicated region fallthrough
CT: control target
= control target key end

     0   :  { %8 = vsyncpa [#allocation3], 0  ;;  %s843_s0 = inlined_call_operand.hbm [shape: f32[16,32], index: 0, kind: input, shape index: {}]   ;;  %s844_s1 = inlined_call_operand.hbm [shape: bf16[32,32], index: 1, kind: input, shape index: {}]   ;;  %s845_s2 = inlined_call_operand.hbm [shape: f32[3,32], index: 2, kind: input, shape index: {}]   ;;  %s846_s3 = inlined_call_operand.hbm [shape: f32[16,32], index: 3, kind: output, shape index: {}]  }
   0x1   :  { %10 = vsyncpa [#allocation3 + $0x1], 0 }
   0x2   :  { %11 = vsyncpa [#allocation6], 0 }
   0x3   :  { %12 = vsyncpa [#allocation4], 0 }
   0x4   :  { %14 = vsyncpa [#allocation4 + $0x1], 0  ;;  %s690_s12 = smov 0   ;;  %s692_s13 = smov 0  }
   0x5   :  { %s694_s14 = smov 0   ;;  %s696_s15 = smov 0  }
   0x6 LB: > { %s130_s18 = sshll.u32 %s844_s1, 4  ;;  %s714_s19 = sadd.s32 4294967295, %s663_s15   ;;  %s663_s15 = sphi %s696_s15, %s857_s15   ;;  %s659_s14 = sphi %s694_s14, %s856_s14   ;;  %s655_s13 = sphi %s692_s13, %s855_s13   ;;  %s651_s12 = sphi %s690_s12, %s854_s12   ;;  %s131_s18 = int_to_ptr.hbm [resolvable:$true] %s130_s18 }
   0x7   : > { %p400_p0 = scmp.ge.s32.totalorder %s663_s15, 1  ;;  %p41_p1 = scmp.eq.s32.totalorder %s714_s19, 0 }
   0x8   : > { %p119_p2 = scmp.lt.s32.totalorder %s663_s15, 3  ;;  %s665_s21 = smov [#allocation5]  }
   0x9   : > { %s132_s22 = sshll.u32 %s665_s21, 4  ;;  %s145_s25 = sshll.u32 %s845_s2, 4  ;;  %s133_s22 = int_to_ptr.vmem [resolvable:$true] %s132_s22  ;;  %s146_s25 = int_to_ptr.hbm [resolvable:$true] %s145_s25 }
   0xa   : > { %p719_p3 = pnand %p400_p0, %p119_p2  ;;  %s666_s26 = smov [#allocation7]  }
   0xb   : > { %s147_s27 = sshll.u32 %s666_s26, 4  ;;  %s667_s28 = smov 64   ;;  %s148_s27 = int_to_ptr.vmem [resolvable:$true] %s147_s27 }
   0xc   : > { %p438_p4 = pneg %p719_p3  ;;  %s668_s29 = smov 4  }
   0xd   : > { %s399_s30 = sadd.s32 4294967294, %s663_s15   ;;  %s733_s4 = sadd.s32 1, %s663_s15  }
   0xe   : > { %p439_p6 = pnand %p438_p4, %p41_p1  ;;  %s24_s5 = ssub.s32 %s663_s15, %s733_s4 }
   0xf   : > { %s27_s6 = sadd.s32 1, %s659_s14  ;;  %p25_p7 = scmp.eq.s32.totalorder %s24_s5, 0 }
  0x10   : > { %441 = dma.hbm_to_vmem [thread:$0]  (!%p439_p6), %s131_s18, 256, %s133_s22, [#allocation6], %s667_s28, %s667_s28, %s668_s29  }
  0x11   : > { %444 = dma.hbm_to_vmem [thread:$0]  (!%p439_p6), %s146_s25, 64, %s148_s27, [#allocation6]  }
  0x12   : > { %p34_p8 = scmp.ne.s32.totalorder %s659_s14, %s655_s13  ;;  %p35_p9 = scmp.eq.s32.totalorder %s663_s15, 0 }
  0x13   : > { %p40_p10 = scmp.ne.s32.totalorder %s655_s13, %s651_s12  ;;  %p106_p13 = scmp.eq.s32.totalorder %s714_s19, 1 }
  0x14   : > { %s744_s7 = scalar_select %p25_p7, %s659_s14, %s27_s6  }
  0x15   : > { %p746_p11 = por %p35_p9, %p34_p8  ;;  %p752_p12 = por %p41_p1, %p40_p10 }
  0x16   : > { %p112_p0 = scmp.eq.s32.totalorder %s399_s30, 1  ;;  %p455_p2 = scmp.lt.s32.totalorder %s663_s15, 2 }
  0x17   : > { %s158_s10 = sand.u32 1, %s659_s14   ;;  %p759_p4 = por %p106_p13, %p34_p8 }
  0x18   : > { %p763_p6 = por %p112_p0, %p40_p10  ;;  %s404_s17 = sshll.u32 %s158_s10, 3 }
  0x19   : > { %s405_s18 = sshll.u32 %s663_s15, 3  ;;  %s162_s24 = scalar_lea.vmem [#allocation2], %s404_s17 }
  0x1a   : > { %s166_s23 = scalar_lea.hbm %s843_s0, %s405_s18  ;;  %s170_s25 = sshll.u32 %s162_s24, 4  ;;  %s171_s25 = int_to_ptr.vmem [resolvable:$true] %s170_s25 }
  0x1b   : > { %s168_s26 = sshll.u32 %s166_s23, 4  ;;  %p773_p7 = pnand %p455_p2, %p746_p11  ;;  %s169_s26 = int_to_ptr.hbm [resolvable:$true] %s168_s26 }
  0x1c   : > { %s159_s28 = scalar_lea.sflag [#allocation3], %s158_s10  ;;  %s563_s29 = sshra.s32 %s169_s26, 4  ;;  %s564_s29 = int_to_ptr.hbm [resolvable:$true] %s563_s29 }
  0x1d   : > { %s565_s30 = scalar_lea.hbm %s564_s29, 8  ;;  %p567_p9 = pneg %p773_p7 }
  0x1e   : > { %p566_p8 = scmp.ne.s32.totalorder %s564_s29, %s565_s30  ;;  %s570_s17 = scalar_lea.hbm %s843_s0, 16 }
  0x1f   : > { %p571_p11 = scmp.lt.s32.totalorder %s564_s29, %s843_s0  ;;  %p572_p0 = scmp.lt.s32.totalorder %s570_s17, %s565_s30 }
  0x20   : > { %p568_p10 = pnand %p567_p9, %p566_p8 }
  0x21   : > { %p573_p2 = por %p572_p0, %p571_p11 }
  0x22   : > { %p569_p13 = pneg %p568_p10 }
  0x24   : > { %p574_p5 = pnand %p573_p2, %p569_p13 }
  0x26   : > { %577 = shalt.err (!%p574_p5)
}
  0x27   : > { %448 = dma.hbm_to_vmem [thread:$0]  (!%p773_p7), %s169_s26, 128, %s171_s25, %s159_s28  }
  0x28   : > { %179 = sbr.rel (%p719_p3) target bundleno = 457 (0x1c9), region = 32  ;;  %s790_s10 = sand.u32 (!%p719_p3), 1, %s655_s13  }
  0x29   : > { %s407_s21 = sshll.u32 (!%p719_p3), %s790_s10, 3  ;;  %s182_s22 = scalar_lea.sflag (!%p719_p3), [#allocation3], %s790_s10 }
  0x2a   : > { %s185_s23 = scalar_lea.vmem (!%p719_p3), [#allocation2], %s407_s21 }
  0x2d   : > { %638 = dma.done.wait (%p752_p12), %s182_s22, 128  }
  0x2e   : > { %640 = vsyncadd (%p752_p12), %s182_s22, 4294967168 }
  0x2f   : > { %642 = dma.done.wait (%p41_p1), [#allocation6], 320  }
  0x30   : > { %644 = vsyncadd (%p41_p1), [#allocation6], 4294966976  ;;  %v425_v0 = vld [vmem:[#allocation5 + $0x8] sm:$0xff]  ;;  %v424_v1 = vld [vmem:[#allocation5] sm:$0xff]  ;;  %vm242_vm0 = vcmask 261120   ;;  %v669_v10 = vmov 32.0  }
  0x31   : > { %252 = vmatpush.bf16.msra.mxu0 %v425_v0  ;;  %v220_v2 = vld [vmem:[%s185_s23] sm:$0xff]  ;;  %499 = vrcp.f32 %v669_v10  ;;  %s421_s20 = sshll.u32 %s714_s19, 3  ;;  %s218_s26 = scalar_lea.vmem [#allocation8], %s407_s21 }
  0x32   : > { %v228_v3 = vpack.c.bf16 %v220_v2, %v220_v2  ;;  %v496_v4 = vld [vmem:[#allocation7] ss:$0 sm:$0xff]  ;;  %v497_v31 = vld [vmem:[#allocation7 + $0x1] ss:$0 sm:$0xff]  ;;  %s305_s25 = scalar_lea.hbm %s846_s3, %s421_s20  ;;  %v498_v34 = vld [vmem:[#allocation7 + $0x2] ss:$0 sm:$0xff] }
  0x33   : > { %s307_s27 = sshll.u32 %s218_s26, 4  ;;  %s309_s28 = sshll.u32 %s305_s25, 4  ;;  %s308_s27 = int_to_ptr.vmem [resolvable:$true] %s307_s27  ;;  %s310_s28 = int_to_ptr.hbm [resolvable:$true] %s309_s28 }
  0x34   : > { %s295_s19 = scalar_lea.sflag [#allocation4], %s790_s10  ;;  %s607_s29 = sshra.s32 %s310_s28, 4  ;;  %s608_s29 = int_to_ptr.hbm [resolvable:$true] %s607_s29 }
  0x35   : > { %253 = vmatpush.bf16.msra.mxu0 %v424_v1  ;;  %s609_s30 = scalar_lea.hbm %s608_s29, 8  ;;  %s613_s17 = scalar_lea.hbm %s846_s3, 16 }
  0x36   : > { %p610_p1 = scmp.ne.s32.totalorder %s608_s29, %s609_s30  ;;  %p614_p12 = scmp.lt.s32.totalorder %s608_s29, %s846_s3 }
  0x37   : > { %v500_v11 = vpop.eup %499  ;;  %p615_p7 = scmp.lt.s32.totalorder %s613_s17, %s609_s30 }
  0x38   : > { %419 = vmatmul.msk.bf16.vlgmr.msra.gmra.mxu0 %vm242_vm0, %v228_v3  ;;  %v264_v12 = vmul.f32 32.0, %v500_v11  ;;  %vm268_vm1 = vweird.f32 %v500_v11  ;;  %p611_p3 = pnand %p610_p1, %p759_p4 }
  0x39   : > { %p616_p8 = por %p615_p7, %p614_p12 }
  0x3a   : > { %v265_v13 = vsub.f32 1.0, %v264_v12  ;;  %p612_p5 = pneg %p611_p3 }
  0x3c   : > { %v266_v14 = vmul.f32 %v500_v11, %v265_v13  ;;  %p617_p9 = pnand %p616_p8, %p612_p5 }
  0x3e   : > { %v267_v15 = vadd.f32 %v500_v11, %v266_v14 }
  0x40   : > { %v269_v16 = vsel %vm268_vm1, %v500_v11, %v267_v15 }
  0xb5   : > { %v255_v5 = vpop.f32.mrf.mxu0 }
  0xb6   : > { %v256_v6 = vadd.f32 %v496_v4, %v255_v5 }
  0xb8   : > { %v259_v7 = vadd.f32 %v256_v6, %v220_v2 }
  0xba   : > { %v260_v8 = vsel %vm242_vm0, %v259_v7, 0.0 }
  0xbb   : > { %261 = vadd.xlane.f32.xlu0 %v260_v8 }
  0xbd   : > { %v257_v9 = vpop.f32.mrf.mxu0 }
 0x12e   : > { %v262_v17 = vpop.xlane.xlu0 %261 }
 0x12f   : > { %v270_v18 = vmul.f32 %v269_v16, %v262_v17 }
 0x131   : > { %v271_v19 = vsub.f32 %v259_v7, %v270_v18 }
 0x133   : > { %v272_v20 = vmul.f32 %v271_v19, %v271_v19 }
 0x135   : > { %v273_v21 = vsel %vm242_vm0, %v272_v20, 0.0 }
 0x136   : > { %274 = vadd.xlane.f32.xlu0 %v273_v21 }
 0x1a9   : > { %v275_v22 = vpop.xlane.xlu0 %274 }
 0x1aa   : > { %v276_v23 = vmul.f32 %v275_v22, %v269_v16 }
 0x1ac   : > { %v277_v24 = vadd.f32 1e-05, %v276_v23 }
 0x1ae   : > { %501 = vrsqrt.f32 %v277_v24  ;;  %vm284_vm3 = vweird.f32 %v277_v24 }
 0x1b4   : > { %v502_v25 = vpop.eup %501 }
 0x1b5   : > { %v279_v26 = vmul.f32 %v502_v25, %v277_v24  ;;  %vm285_vm2 = vweird.f32 %v502_v25 }
 0x1b6   : > { %vm286_vm4 = vmor %vm284_vm3, %vm285_vm2 }
 0x1b7   : > { %v280_v27 = vmul.f32 %v502_v25, %v279_v26 }
 0x1b9   : > { %v281_v28 = vmul.f32 0.5, %v280_v27 }
 0x1bb   : > { %v282_v29 = vsub.f32 1.5, %v281_v28 }
 0x1bd   : > { %v283_v30 = vmul.f32 %v502_v25, %v282_v29 }
 0x1bf   : > { %v287_v32 = vsel %vm286_vm4, %v502_v25, %v283_v30 }
 0x1c0   : > { %v288_v33 = vmul.f32 %v287_v32, %v271_v19 }
 0x1c2   : > { %v290_v35 = vmul.f32 %v497_v31, %v288_v33 }
 0x1c4   : > { %v292_v36 = vadd.f32 %v498_v34, %v290_v35 }
 0x1c6   : > { %293 = vst.msk [vmem:[%s218_s26] sm:$0xff] %vm242_vm0, %v292_v36 }
 0x1c7   : > { %620 = shalt.err (!%p617_p9)
}
 0x1c8   : > { %436 = dma.vmem_to_hbm [thread:$0]  (%p759_p4), %s308_s27, 128, %s310_s28, %s295_s19  }
 0x1c9 PF: > { %s321_s10 = sand.u32 1, %s651_s12   ;;  %p853_p10 = scmp.ge.s32.totalorder %s663_s15, 2 }
 0x1ca   : > { %s322_s21 = scalar_lea.sflag [#allocation4], %s321_s10 }
 0x1cb   : > { %p450_p13 = pnand %p853_p10, %p763_p6 }
 0x1cd   : > { %p451_p11 = pneg %p450_p13 }
 0x1cf   : > { %646 = dma.done.wait (%p451_p11), %s322_s21, 128  }
 0x1d0   : > { %648 = vsyncadd (%p451_p11), %s322_s21, 4294967168  ;;  %p17_p0 = scmp.ge.s32.totalorder %s733_s4, 4   ;;  %s854_s12 = smov %s655_s13 }
 0x1d1   : > { %s855_s13 = smov %s659_s14  ;;  %s856_s14 = smov %s744_s7 }
 0x1d2   : > { %s857_s15 = smov %s733_s4  ;;  %19 = sbr.rel (!%p17_p0) target bundleno = 6 (0x6), region = 85 }
 0x1d7   :  { %328 = vsyncpa [#allocation3], 1 }
 0x1d8   :  { %330 = vsyncpa [#allocation3 + $0x1], 1 }
 0x1d9   :  { %331 = vsyncpa [#allocation6], 1 }
 0x1da   :  { %332 = vsyncpa [#allocation4], 1 }
 0x1db   :  { %334 = vsyncpa [#allocation4 + $0x1], 1 }

</bundles_post_ra>
